<compile_context>
chip_gen: v7x
topology: tpu7x:2x2x1
jax: 0.10.0
libtpu: 0.0.40
codegen_flags: <defaults>
</compile_context>

<pallas_src>
import functools

import jax
import jax.numpy as jnp
from jax.experimental import pallas as pl
from jax.experimental.pallas import tpu as pltpu


# ---------------------------------------------------------------------------
# helpers
# ---------------------------------------------------------------------------
def _pick_block_dim(dim, cap, align):
    """Largest divisor of `dim` that is <= cap and a multiple of `align`.

    Falls back to the full dim (always a legal Pallas block extent) when no
    such divisor exists, so the (8, 128) block-shape rule is never violated.
    """
    if dim <= cap:
        return dim
    for c in range(min(cap, dim), 0, -1):
        if dim % c == 0 and c % align == 0:
            return c
    return dim


# ---------------------------------------------------------------------------
# Pallas kernels
# ---------------------------------------------------------------------------
def _deconv_kernel(x_ref, w_ref, b_ref, o_ref, *, cin, use_vpu):
    # x: (Cin, TS)   w: (Cout*4, Cin)   b: (Cout*4, 1)   o: (Cout*4, TS)
    x = x_ref[...]
    w = w_ref[...]
    if use_vpu:
        # Tiny contraction: a few broadcast FMAs on the VPU (no MXU fill/drain,
        # no (8,128) weight padding).  Unrolled: cin is a small static int.
        acc = w[:, 0:1] * x[0:1, :]
        for ci in range(1, cin):
            acc = acc + w[:, ci:ci + 1] * x[ci:ci + 1, :]
    else:
        acc = jnp.dot(w, x, preferred_element_type=jnp.float32)
    o_ref[...] = (acc + b_ref[...]).astype(o_ref.dtype)


def _add_kernel(a_ref, b_ref, o_ref):
    o_ref[...] = a_ref[...] + b_ref[...]


# ---------------------------------------------------------------------------
# Wrappers
# ---------------------------------------------------------------------------
def conv_transpose_2x2_stride2(x_nchw, w, b, *, spatial_tile=1024):
    """nn.ConvTranspose2d(Cin, Cout, kernel_size=2, stride=2) forward.

    x_nchw: (N, Cin, H, W);  w: (Cin, Cout, 2, 2) [PyTorch layout];  b: (Cout,)
    returns (N, Cout, 2H, 2W) float32.
    """
    N, Cin, H, W = x_nchw.shape
    Cout = w.shape[1]
    Cout4 = Cout * 4
    HW = H * W

    # NCHW already is channels-in-sublane / spatial-in-lane per sample; this
    # reshape is a free contiguous view (no HBM transpose pass).
    x_flat = x_nchw.reshape(N, Cin, HW)
    # (Cin, Cout, 2, 2) -> (Cout*4, Cin); row index = co*4 + dh*2 + dw.
    w_t = jnp.transpose(w.reshape(Cin, Cout4), (1, 0))
    # Bias in the same (co, dh, dw) row order, broadcast along lanes in-kernel.
    b_col = jnp.repeat(b, 4).reshape(Cout4, 1)

    ts = _pick_block_dim(HW, spatial_tile, 128)
    grid = (N, HW // ts)

    kernel = functools.partial(_deconv_kernel, cin=Cin, use_vpu=(Cin <= 8))

    y_flat = pl.pallas_call(
        kernel,
        out_shape=jax.ShapeDtypeStruct((N, Cout4, HW), jnp.float32),
        grid=grid,
        in_specs=[
            pl.BlockSpec((None, Cin, ts), lambda n, s: (n, 0, s)),
            pl.BlockSpec((Cout4, Cin), lambda n, s: (0, 0)),   # VMEM-resident
            pl.BlockSpec((Cout4, 1), lambda n, s: (0, 0)),     # VMEM-resident
        ],
        out_specs=pl.BlockSpec((None, Cout4, ts), lambda n, s: (n, 0, s)),
        compiler_params=pltpu.CompilerParams(
            dimension_semantics=("parallel", "parallel")),
    )(x_flat, w_t, b_col)

    # 2x2 pixel scatter back to NCHW: pure layout glue (no compute).
    # TODO(synk): fuse this relayout (and the skip add) into the kernel epilogue.
    y = y_flat.reshape(N, Cout, 2, 2, H, W)
    y = jnp.transpose(y, (0, 1, 4, 2, 5, 3)).reshape(N, Cout, 2 * H, 2 * W)
    return y


def elementwise_add(a, b, *, col_tile=2048, max_block_elems=128 * 1024):
    """Tiled, lane-dense skip-connection add on a (N*C, H*W) view."""
    assert a.shape == b.shape and a.dtype == b.dtype
    rows = a.shape[0] * a.shape[1]
    cols = a.shape[2] * a.shape[3]
    a2 = a.reshape(rows, cols)
    b2 = b.reshape(rows, cols)

    tc = _pick_block_dim(cols, col_tile, 128)          # lane-dense last dim
    tr_cap = max(8, max_block_elems // tc)             # cap VMEM per block
    tr = _pick_block_dim(rows, tr_cap, 8)
    grid = (rows // tr, cols // tc)

    out = pl.pallas_call(
        _add_kernel,
        out_shape=jax.ShapeDtypeStruct((rows, cols), a.dtype),
        grid=grid,
        in_specs=[
            pl.BlockSpec((tr, tc), lambda i, j: (i, j)),
            pl.BlockSpec((tr, tc), lambda i, j: (i, j)),
        ],
        out_specs=pl.BlockSpec((tr, tc), lambda i, j: (i, j)),
        compiler_params=pltpu.CompilerParams(
            dimension_semantics=("parallel", "parallel")),
    )(a2, b2)
    return out.reshape(a.shape)


# ---------------------------------------------------------------------------
# UpAdd module (params + forward)
# ---------------------------------------------------------------------------
def init_up_add_params(key, in_feat, out_feat):
    k1, k2, k3, k4 = jax.random.split(key, 4)
    s = 1.0 / float(jnp.sqrt(out_feat * 4.0))  # fan-based uniform, deterministic
    return {
        "up_w": jax.random.uniform(k1, (in_feat, out_feat, 2, 2), jnp.float32, -s, s),
        "up_b": jax.random.uniform(k2, (out_feat,), jnp.float32, -s, s),
        "up1_w": jax.random.uniform(k3, (out_feat, out_feat, 2, 2), jnp.float32, -s, s),
        "up1_b": jax.random.uniform(k4, (out_feat,), jnp.float32, -s, s),
    }


def up_add_forward(params, inputs, down_outputs, in_feat, is_deconv=True):
    """inputs: (N, C_out, H2, W2) NCHW;  down_outputs: (N, in_feat, H, W) NCHW."""
    # TODO(synk): is_deconv=False (bilinear nn.Upsample) path not implemented.
    assert is_deconv, "only the deconv path is implemented"
    outputs = conv_transpose_2x2_stride2(down_outputs, params["up_w"], params["up_b"])
    if in_feat == 96:
        # TODO(synk): keep the intermediate in the flat (Cout*4, HW) layout here
        # to skip one scatter/unscatter pair between the two deconvs.
        outputs = conv_transpose_2x2_stride2(outputs, params["up1_w"], params["up1_b"])
    offset = inputs.shape[3] - outputs.shape[3]
    # TODO(synk): the offset != 0 branches pad with torch.rand (runtime randomness,
    # no fixed semantics); shapes are chosen so offset == 0 and the branches are skipped.
    assert offset == 0, "random-padding branches not implemented"
    return elementwise_add(inputs, outputs)


# ---------------------------------------------------------------------------
# Main
# ---------------------------------------------------------------------------
def _run_case(key, N, in_feat, out_feat, H):
    W = H
    H2, W2 = 2 * H, 2 * W
    kp, ka, kb = jax.random.split(key, 3)
    params = init_up_add_params(kp, in_feat, out_feat)
    inputs = jax.random.normal(ka, (N, out_feat, H2, W2), jnp.float32)
    down_outputs = jax.random.normal(kb, (N, in_feat, H, W), jnp.float32)

    out = up_add_forward(params, inputs, down_outputs, in_feat)
    out = jax.block_until_ready(out)

    # Pure-JAX reference (exact-precision contraction to match the kernel).
    ref_y = jnp.einsum(
        "nchw,cokl->nohkwl", down_outputs, params["up_w"],
        precision=jax.lax.Precision.HIGHEST,
    ).reshape(N, out_feat, H2, W2) + params["up_b"][None, :, None, None]
    ref = inputs + ref_y

    assert out.shape == (N, out_feat, H2, W2)
    err = float(jnp.max(jnp.abs(out - ref)))
    assert err < 1e-4, f"mismatch vs reference: max abs err {err}"
    return err


if __name__ == "__main__":
    root = jax.random.PRNGKey(0)
    k_a, k_b = jax.random.split(root)
    _run_case(k_a, N=2, in_feat=4, out_feat=4, H=8)      # VPU contraction path (Cin<=8)
    _run_case(k_b, N=1, in_feat=16, out_feat=16, H=16)   # MXU dot path, tiled add
    print("KERNEL_OK")
</pallas_src>

<mosaic_0001>
module attributes {stable_mosaic.version = 11 : i64} {
  func.func @_deconv_kernel(%arg0: i32, %arg1: i32, %arg2: memref<1x4x64xf32, #tpu.memory_space<vmem>>, %arg3: memref<16x4xf32, #tpu.memory_space<vmem>>, %arg4: memref<16x1xf32, #tpu.memory_space<vmem>>, %arg5: memref<1x16x64xf32, #tpu.memory_space<vmem>>) attributes {dimension_semantics = [#tpu.dimension_semantics<parallel>, #tpu.dimension_semantics<parallel>], iteration_bounds = array<i64: 2, 1>, scalar_prefetch = 0 : i64, scratch_operands = 0 : i64, tpu.core_type = #tpu.core_type<tc>, window_params = [{transform_indices = @transform_0, window_bounds = array<i64: 1, 4, 64>}, {pipeline_mode = #tpu.pipeline_mode<synchronous>, transform_indices = @transform_1, window_bounds = array<i64: 16, 4>}, {pipeline_mode = #tpu.pipeline_mode<synchronous>, transform_indices = @transform_2, window_bounds = array<i64: 16, 1>}, {transform_indices = @transform_3, window_bounds = array<i64: 1, 16, 64>}]} {
    %c0 = arith.constant 0 : index
    %c0_0 = arith.constant 0 : index
    %c0_1 = arith.constant 0 : index
    %0 = vector.load %arg2[%c0, %c0_0, %c0_1] : memref<1x4x64xf32, #tpu.memory_space<vmem>>, vector<1x4x64xf32>
    %1 = vector.shape_cast %0 : vector<1x4x64xf32> to vector<4x64xf32>
    %c0_2 = arith.constant 0 : index
    %c0_3 = arith.constant 0 : index
    %2 = vector.load %arg3[%c0_2, %c0_3] : memref<16x4xf32, #tpu.memory_space<vmem>>, vector<16x4xf32>
    %3 = vector.extract_strided_slice %2 {offsets = [0, 0], sizes = [16, 1], strides = [1, 1]} : vector<16x4xf32> to vector<16x1xf32>
    %4 = vector.extract_strided_slice %1 {offsets = [0, 0], sizes = [1, 64], strides = [1, 1]} : vector<4x64xf32> to vector<1x64xf32>
    %5 = vector.broadcast %3 : vector<16x1xf32> to vector<16x64xf32>
    %6 = vector.broadcast %4 : vector<1x64xf32> to vector<16x64xf32>
    %7 = arith.mulf %5, %6 : vector<16x64xf32>
    %8 = vector.extract_strided_slice %2 {offsets = [0, 1], sizes = [16, 1], strides = [1, 1]} : vector<16x4xf32> to vector<16x1xf32>
    %9 = vector.extract_strided_slice %1 {offsets = [1, 0], sizes = [1, 64], strides = [1, 1]} : vector<4x64xf32> to vector<1x64xf32>
    %10 = vector.broadcast %8 : vector<16x1xf32> to vector<16x64xf32>
    %11 = vector.broadcast %9 : vector<1x64xf32> to vector<16x64xf32>
    %12 = arith.mulf %10, %11 : vector<16x64xf32>
    %13 = arith.addf %7, %12 : vector<16x64xf32>
    %14 = vector.extract_strided_slice %2 {offsets = [0, 2], sizes = [16, 1], strides = [1, 1]} : vector<16x4xf32> to vector<16x1xf32>
    %15 = vector.extract_strided_slice %1 {offsets = [2, 0], sizes = [1, 64], strides = [1, 1]} : vector<4x64xf32> to vector<1x64xf32>
    %16 = vector.broadcast %14 : vector<16x1xf32> to vector<16x64xf32>
    %17 = vector.broadcast %15 : vector<1x64xf32> to vector<16x64xf32>
    %18 = arith.mulf %16, %17 : vector<16x64xf32>
    %19 = arith.addf %13, %18 : vector<16x64xf32>
    %20 = vector.extract_strided_slice %2 {offsets = [0, 3], sizes = [16, 1], strides = [1, 1]} : vector<16x4xf32> to vector<16x1xf32>
    %21 = vector.extract_strided_slice %1 {offsets = [3, 0], sizes = [1, 64], strides = [1, 1]} : vector<4x64xf32> to vector<1x64xf32>
    %22 = vector.broadcast %20 : vector<16x1xf32> to vector<16x64xf32>
    %23 = vector.broadcast %21 : vector<1x64xf32> to vector<16x64xf32>
    %24 = arith.mulf %22, %23 : vector<16x64xf32>
    %25 = arith.addf %19, %24 : vector<16x64xf32>
    %c0_4 = arith.constant 0 : index
    %c0_5 = arith.constant 0 : index
    %26 = vector.load %arg4[%c0_4, %c0_5] : memref<16x1xf32, #tpu.memory_space<vmem>>, vector<16x1xf32>
    %27 = vector.broadcast %26 : vector<16x1xf32> to vector<16x64xf32>
    %28 = arith.addf %25, %27 : vector<16x64xf32>
    %c0_6 = arith.constant 0 : index
    %c0_7 = arith.constant 0 : index
    %c0_8 = arith.constant 0 : index
    %29 = vector.load %arg5[%c0_6, %c0_7, %c0_8] : memref<1x16x64xf32, #tpu.memory_space<vmem>>, vector<1x16x64xf32>
    %30 = vector.shape_cast %29 : vector<1x16x64xf32> to vector<16x64xf32>
    %31 = vector.shape_cast %28 : vector<16x64xf32> to vector<1x16x64xf32>
    tpu.vector_store %arg5[%c0_6, %c0_7, %c0_8], %31 {strides = array<i32>} : memref<1x16x64xf32, #tpu.memory_space<vmem>>, vector<1x16x64xf32>,
    return
  }
  func.func @transform_0(%arg0: i32, %arg1: i32) -> (i32, i32, i32) {
    %c0_i32 = arith.constant 0 : i32
    %c0_i32_0 = arith.constant 0 : i32
    return %arg0, %c0_i32, %arg1 : i32, i32, i32
  }
  func.func @transform_1(%arg0: i32, %arg1: i32) -> (i32, i32) {
    %c0_i32 = arith.constant 0 : i32
    %c0_i32_0 = arith.constant 0 : i32
    %c0_i32_1 = arith.constant 0 : i32
    return %c0_i32, %c0_i32_0 : i32, i32
  }
  func.func @transform_2(%arg0: i32, %arg1: i32) -> (i32, i32) {
    %c0_i32 = arith.constant 0 : i32
    %c0_i32_0 = arith.constant 0 : i32
    %c0_i32_1 = arith.constant 0 : i32
    return %c0_i32, %c0_i32_0 : i32, i32
  }
  func.func @transform_3(%arg0: i32, %arg1: i32) -> (i32, i32, i32) {
    %c0_i32 = arith.constant 0 : i32
    %c0_i32_0 = arith.constant 0 : i32
    return %arg0, %c0_i32, %arg1 : i32, i32, i32
  }
}

</mosaic_0001>

<bundles_post_ra>
// kernel: tpu_custom_call.1
= control target key start
LH: loop header
LB: loop body
LE: loop exit
PB: predicated region body
PF: predicated region fallthrough
CT: control target
= control target key end

     0   :  { %8 = vsyncpa [#allocation3], 0  ;;  %s681_s0 = inlined_call_operand.vmem [shape: f32[2,4,64], index: 0, kind: input, shape index: {}]   ;;  %s682_s1 = inlined_call_operand.vmem [shape: f32[16,4], index: 1, kind: input, shape index: {}]   ;;  %s683_s2 = inlined_call_operand.vmem [shape: f32[16,1], index: 2, kind: input, shape index: {}]   ;;  %s684_s3 = inlined_call_operand.hbm [shape: f32[2,16,64], index: 3, kind: output, shape index: {}]  }
   0x1   :  { %10 = vsyncpa [#allocation3 + $0x1], 0  ;;  %s554_s12 = smov 0   ;;  %s556_s13 = smov 0  }
   0x2   :  { %s558_s14 = smov 0   ;;  %s560_s15 = smov 0  }
   0x3   :  { %s562_s16 = smov 0   ;;  %s564_s17 = smov 0  }
   0x4 LB: > { %s365_s18 = sadd.s32 4294967295, %s525_s17   ;;  %s366_s19 = sadd.s32 4294967294, %s525_s17   ;;  %s525_s17 = sphi %s564_s17, %s16_s17   ;;  %s521_s16 = sphi %s562_s16, %s691_s16   ;;  %s517_s15 = sphi %s560_s15, %s690_s15   ;;  %s513_s14 = sphi %s558_s14, %s689_s14   ;;  %s509_s13 = sphi %s556_s13, %s688_s13   ;;  %s505_s12 = sphi %s554_s12, %s687_s12  }
   0x5   : > { %s28_s20 = sadd.s32 1, %s521_s16  ;;  %s107_s21 = sadd.s32 1, %s513_s14 }
   0x6   : > { %p30_p0 = scmp.ge.s32.totalorder %s28_s20, 2  ;;  %p117_p1 = scmp.ne.s32.totalorder %s513_s14, %s509_s13 }
   0x7   : > { %p118_p2 = scmp.eq.s32.totalorder %s365_s18, 1  ;;  %p123_p3 = scmp.ne.s32.totalorder %s509_s13, %s505_s12 }
   0x8   : > { %s693_s20 = smov (%p30_p0, %s28_s20), 0  ;;  %p124_p5 = scmp.eq.s32.totalorder %s366_s19, 1 }
   0x9   : > { %p594_p4 = por %p118_p2, %p117_p1  ;;  %s102_s23 = ssub.s32 %s521_s16, %s693_s20 }
   0xa   : > { %p369_p6 = scmp.ge.s32.totalorder %s525_s17, 1  ;;  %p105_p7 = scmp.eq.s32.totalorder %s102_s23, 0 }
   0xb   : > { %p601_p8 = por %p124_p5, %p123_p3  ;;  %p158_p9 = scmp.lt.s32.totalorder %s525_s17, 3 }
   0xc   : > { %s607_s25 = scalar_select %p105_p7, %s513_s14, %s107_s21  }
   0xd   : > { %p159_p10 = pnand %p369_p6, %p158_p9 }
   0xe   : > { %v192_v0 = vld [vmem:[%s682_s1] sm:$0xff] (!%p159_p10)  ;;  %v527_v1 = vmov (!%p159_p10), 1   ;;  %v528_v2 = vmov (!%p159_p10), 0   ;;  %v193_v3 = vld [vmem:[%s682_s1 + $0x8] sm:$0xff] (!%p159_p10)  ;;  %v529_v4 = vmov (!%p159_p10), 2   ;;  %v530_v5 = vmov (!%p159_p10), 3  }
   0xf   : > { %162 = sbr.rel (%p159_p10) target bundleno = 184 (0xb8), region = 32  ;;  %440 = vset.pattern.permute.xlu1 (!%p159_p10), %v527_v1  ;;  %439 = vset.pattern.permute.xlu0 (!%p159_p10), %v528_v2  ;;  %v258_v6 = vld [vmem:[%s683_s2] sm:$0xff] (!%p159_p10)  ;;  %v259_v7 = vld [vmem:[%s683_s2 + $0x8] sm:$0xff] (!%p159_p10)  ;;  %p184_p11 = scmp.lt.s32.totalorder (!%p159_p10), %s517_s15, 1  ;;  %v204_v8 = vlaneseq (!%p159_p10)  ;;  %vm272_vm0 = vcmask (!%p159_p10), 523264  }
  0x10   : > { %211 = vperm.xlu1 (!%p159_p10), %440, %v192_v0   ;;  %196 = vperm.xlu0 (!%p159_p10), %439, %v192_v0   ;;  %s181_s18 = sand.u32 (!%p159_p10), 1, %s509_s13   ;;  %s377_s26 = sshll.u32 (!%p159_p10), %s517_s15, 8 }
  0x11   : > { %v205_v9 = vshrl.u32 (!%p159_p10), %v204_v8, 7  ;;  %s370_s19 = sshll.u32 (!%p159_p10), %s181_s18, 4  ;;  %s633_s29 = scalar_lea.hbm (!%p159_p10), %s684_s3, %s377_s26 }
  0x12   : > { %s183_s21 = scalar_lea.vmem (!%p159_p10), [#allocation2], %s370_s19  ;;  %s635_s30 = scalar_lea.sflag (!%p159_p10), [#allocation3], %s181_s18 }
  0x13   : > { %v220_v12 = vsub.s32 (!%p159_p10), 1, %v205_v9  ;;  %v206_v13 = vsub.s32 (!%p159_p10), 0, %v205_v9  ;;  %v236_v15 = vsub.s32 (!%p159_p10), 2, %v205_v9  ;;  %v252_v21 = vsub.s32 (!%p159_p10), 3, %v205_v9  ;;  %s290_s23 = sshll.u32 (!%p159_p10), %s183_s21, 4  ;;  %s628_s23 = int_to_ptr.vmem [resolvable:$true] %s290_s23 }
  0x14   : > { %215 = vperm.xlu1 (!%p159_p10), %440, %v193_v3   ;;  %201 = vperm.xlu0 (!%p159_p10), %439, %v193_v3   ;;  %s447_s4 = scalar_lea.vmem (!%p159_p10), %s628_s23, 256 }
  0x15   : > { %p448_p12 = scmp.ne.s32.totalorder (!%p159_p10), %s628_s23, %s447_s4 }
  0x16   : > { %s185_s7 = scalar_select %p184_p11, %s517_s15, 1 }
  0x17   : > { %p449_p13 = pnand %p448_p12, %p594_p4  ;;  %s531_s15 = smov [#allocation2]  }
  0x18   : > { %442 = vset.pattern.permute.xlu1 %v529_v4  ;;  %441 = vset.pattern.permute.xlu0 %v529_v4  ;;  %s371_s8 = sshll.u32 %s185_s7, 2  ;;  %s451_s5 = sshll.u32 %s531_s15, 4  ;;  %s452_s5 = int_to_ptr.vmem [resolvable:$false] %s451_s5 }
  0x19   : > { %231 = vperm.xlu1 %442, %v193_v3   ;;  %227 = vperm.xlu0 %441, %v192_v0   ;;  %s190_s11 = scalar_lea.vmem %s681_s0, %s371_s8  ;;  %p450_p0 = pneg %p449_p13 }
  0x1a   : > { %v191_v14 = vld [vmem:[%s190_s11] sm:$0xf]  ;;  %s453_s6 = scalar_lea.vmem %s452_s5, 512  ;;  %p454_p1 = scmp.lt.s32.totalorder %s628_s23, %s452_s5 }
  0x1b   : > { %v221_v18 = vrot.slane %v191_v14, %v220_v12  ;;  %v207_v19 = vrot.slane %v191_v14, %v206_v13  ;;  %v237_v20 = vrot.slane %v191_v14, %v236_v15  ;;  %v253_v27 = vrot.slane %v191_v14, %v252_v21  ;;  %p455_p2 = scmp.lt.s32.totalorder %s453_s6, %s447_s4 }
  0x1d   : > { %443 = vset.pattern.permute.xlu1 %v530_v5  ;;  %444 = vset.pattern.permute.xlu0 %v530_v5  ;;  %p456_p3 = por %p455_p2, %p454_p1 }
  0x1e   : > { %243 = vperm.xlu1 %443, %v192_v0   ;;  %247 = vperm.xlu0 %444, %v193_v3  }
  0x1f   : > { %p457_p5 = pnand %p456_p3, %p450_p0 }
  0x22   : > { %445 = vset.pattern.permute.xlu1 %v528_v2  ;;  %446 = vset.pattern.permute.xlu0 %v528_v2 }
  0x23   : > { %262 = vperm.xlu1 %445, %v258_v6  }
  0x27   : > { %267 = vperm.xlu1 %445, %v259_v7  }
  0x8f   : > { %v212_v10 = vpop.permute.xlu1 %211  ;;  %v197_v11 = vpop.permute.xlu0 %196 }
  0x90   : > { %v222_v22 = vmul.f32 %v221_v18, %v212_v10  ;;  %v208_v23 = vmul.f32 %v207_v19, %v197_v11 }
  0x92   : > { %v224_v28 = vadd.f32 %v222_v22, %v208_v23 }
  0x93   : > { %v216_v16 = vpop.permute.xlu1 %215  ;;  %v202_v17 = vpop.permute.xlu0 %201 }
  0x94   : > { %v223_v29 = vmul.f32 %v221_v18, %v216_v16  ;;  %v209_v30 = vmul.f32 %v207_v19, %v202_v17 }
  0x96   : > { %v225_v37 = vadd.f32 %v223_v29, %v209_v30 }
  0x98   : > { %v232_v24 = vpop.permute.xlu1 %231  ;;  %v228_v25 = vpop.permute.xlu0 %227 }
  0x99   : > { %v238_v26 = vmul.f32 %v237_v20, %v228_v25  ;;  %v239_v35 = vmul.f32 %v237_v20, %v232_v24 }
  0x9b   : > { %v240_v32 = vadd.f32 %v238_v26, %v224_v28  ;;  %v241_v40 = vadd.f32 %v239_v35, %v225_v37 }
  0x9d   : > { %v244_v31 = vpop.permute.xlu1 %243  ;;  %v248_v34 = vpop.permute.xlu0 %247 }
  0x9e   : > { %v254_v33 = vmul.f32 %v253_v27, %v244_v31  ;;  %v255_v38 = vmul.f32 %v253_v27, %v248_v34 }
  0xa0   : > { %v256_v36 = vadd.f32 %v254_v33, %v240_v32  ;;  %v257_v42 = vadd.f32 %v255_v38, %v241_v40 }
  0xa2   : > { %v263_v39 = vpop.permute.xlu1 %262 }
  0xa3   : > { %v270_v41 = vadd.f32 %v263_v39, %v256_v36 }
  0xa5   : > { %273 = vst.msk [vmem:[%s183_s21] sm:$0xff] %vm272_vm0, %v270_v41 }
  0xa6   : > { %v268_v43 = vpop.permute.xlu1 %267 }
  0xa7   : > { %v271_v44 = vadd.f32 %v268_v43, %v257_v42 }
  0xa9   : > { %274 = vst.msk [vmem:[%s183_s21 + $0x8] sm:$0xff] %vm272_vm0, %v271_v44 }
  0xaa   : > { %460 = shalt.err (!%p457_p5)
}
  0xab   : > { %s461_s7 = scalar_lea.hbm %s633_s29, 256  ;;  %s465_s10 = scalar_lea.hbm %s684_s3, 512 }
  0xac   : > { %p462_p6 = scmp.ne.s32.totalorder %s633_s29, %s461_s7  ;;  %p466_p10 = scmp.lt.u32.totalorder %s633_s29, %s684_s3 }
  0xad   : > { %p467_p11 = scmp.lt.u32.totalorder %s465_s10, %s461_s7  ;;  %p469_p13 = scmp.lt.u32.totalorder %s461_s7, %s633_s29 }
  0xae   : > { %p463_p7 = pnand %p462_p6, %p594_p4 }
  0xaf   : > { %p468_p12 = por %p467_p11, %p466_p10 }
  0xb0   : > { %p464_p9 = pneg %p463_p7 }
  0xb1   : > { %p470_p0 = por %p469_p13, %p468_p12 }
  0xb3   : > { %p471_p1 = pnand %p470_p0, %p464_p9 }
  0xb5   : > { %474 = shalt.err (!%p471_p1)
}
  0xb6   : > { %s532_s19 = smov 128   ;;  %s533_s21 = smov 8  }
  0xb7   : > { %378 = dma.vmem_to_hbm [thread:$0]  (%p594_p4), %s628_s23, 256, %s633_s29, %s635_s30, %s532_s19, %s532_s19, %s533_s21  }
  0xb8 PF: > { %p384_p2 = scmp.ge.s32.totalorder %s525_s17, 2  ;;  %s305_s26 = sand.u32 1, %s505_s12  }
  0xb9   : > { %s306_s27 = scalar_lea.sflag [#allocation3], %s305_s26 }
  0xba   : > { %p381_p3 = pnand %p384_p2, %p601_p8 }
  0xbc   : > { %500 = dma.done.wait (!%p381_p3), %s306_s27, 256  }
  0xbd   : > { %502 = vsyncadd (!%p381_p3), %s306_s27, 4294967040  ;;  %s16_s17 = sadd.s32 1, %s525_s17   ;;  %s687_s12 = smov %s509_s13 }
  0xbe   : > { %p13_p5 = scmp.ge.s32.totalorder %s16_s17, 4   ;;  %s688_s13 = smov %s513_s14 }
  0xbf   : > { %s689_s14 = smov %s607_s25  ;;  %s690_s15 = smov %s521_s16 }
  0xc0   : > { %s691_s16 = smov %s693_s20  ;;  %15 = sbr.rel (!%p13_p5) target bundleno = 4 (0x4), region = 67 }
  0xc7   :  { %311 = vsyncpa [#allocation3], 1 }
  0xc8   :  { %313 = vsyncpa [#allocation3 + $0x1], 1 }

</bundles_post_ra>
